<compile_context>
chip_gen: v5e
topology: v5e:2x2
jax: 0.10.0
libtpu: 0.0.40
codegen_flags: <defaults>
</compile_context>

<pallas_src>
import numpy as np
import jax
import jax.numpy as jnp
from jax.experimental import pallas as pl
from jax.experimental.pallas import tpu as pltpu

_LANES = 128                                       # packed-slab / output lane width
_B1_ROW, _B2_ROW, _B3_ROW, _BF_ROW = 0, 8, 16, 24  # f32 bias-slab rows (8-aligned)
_BIAS_ROWS = 32


# ----------------------------------------------------------------------------
# Host-side, init-time precompute (numpy, mirroring the torch double math).
# Depends only on the fixed adjacency A, never on the input X.
# ----------------------------------------------------------------------------
def _reverse_cuthill_mckee(adj):
    # TODO(synk): sequential graph reordering (scipy reverse_cuthill_mckee) has
    # no Pallas equivalent and may use a different start-node heuristic; it
    # runs once on the host at init (pure numpy).
    adj = np.asarray(adj, dtype=bool)
    n = adj.shape[0]
    degree = adj.sum(axis=1)
    visited = np.zeros(n, dtype=bool)
    order = []
    while len(order) < n:
        unvisited = np.flatnonzero(~visited)
        start = int(unvisited[np.argmin(degree[unvisited])])
        visited[start] = True
        queue = [start]
        while queue:
            u = queue.pop(0)
            order.append(u)
            nbrs = np.flatnonzero(adj[u] & ~visited)
            nbrs = nbrs[np.argsort(degree[nbrs], kind="stable")]
            for v in nbrs:
                visited[v] = True
                queue.append(int(v))
    return np.asarray(order[::-1], dtype=np.int64)


def build_propagation_matrix(a, blk_size=16):
    """M = P^T . blockdiag_16(P A_hat P^T) . P  with A_hat = D^-1/2 (A+I) D^-1/2."""
    a = np.asarray(a, dtype=np.float64)
    n = a.shape[0]
    if n < blk_size:
        raise ValueError("graph needs >= blk_size nodes (as in the torch code)")
    a_hat = a + np.eye(n)
    d = np.diag(np.power(a_hat.sum(axis=0), -0.5))
    a_hat = d @ a_hat @ d
    p = _reverse_cuthill_mckee(a_hat != 0)      # csr structure includes diagonal
    perm = np.eye(n)[p]                          # P
    a_plus = perm @ a_hat @ perm.T               # P A_hat P^T
    blockdiag = np.zeros_like(a_plus)
    start = 0
    for _ in range(n // blk_size):
        end = start + blk_size
        if end + blk_size > n:
            end = n
        blockdiag[start:end, start:end] = a_plus[start:end, start:end]
        start = end
    return perm.T @ blockdiag @ perm


def _round_up(v, m):
    return ((v + m - 1) // m) * m


def pack_hybrid_params(m, x, w1, b1, w2, b2, w3, b3, wc, bc):
    """Init-time folding + packing of all HybridModel constants into 3 operands.

    m : (N,N) folded propagation operator, x : (N,F0) node features,
    w*: torch nn.Linear layout (out_features, in_features), b*: (out,) biases.
    Returns (m_bf16, wslab_bf16, bslab_f32, meta).
    """
    m = np.asarray(m, np.float32)
    x = np.asarray(x, np.float32)
    w1, w2, w3, wc = (np.asarray(w, np.float32) for w in (w1, w2, w3, wc))
    b1, b2, b3, bc = (np.asarray(b, np.float32).reshape(-1) for b in (b1, b2, b3, bc))
    n = m.shape[0]
    h1, h2, h3 = w1.shape[0], w2.shape[0], w3.shape[0]

    # bf16 weight slab; row blocks aligned to the bf16 (16,128) VMEM tile.
    r_x = 0
    r_w2 = _round_up(n, 16)
    r_w3 = r_w2 + 16
    r_wf = r_w3 + 16
    w_rows = r_wf + 16
    wslab = np.zeros((w_rows, _LANES), np.float32)
    wslab[r_x:r_x + n, :h1] = x @ w1.T           # layer-1 fold: X @ W1^T
    wslab[r_w2:r_w2 + h1, :h2] = w2.T            # pre-transposed (in, out)
    wslab[r_w3:r_w3 + h2, :h3] = w3.T
    # Wide final projection: col 0 = classifier weight, cols 1..h3 = identity
    # passthrough that carries the feature-model output into the packed result.
    wslab[r_wf:r_wf + h3, 0] = wc.reshape(-1)
    wslab[r_wf:r_wf + h3, 1:1 + h3] = np.eye(h3)

    bslab = np.zeros((_BIAS_ROWS, _LANES), np.float32)
    bslab[_B1_ROW, :h1] = b1
    bslab[_B2_ROW, :h2] = b2
    bslab[_B3_ROW, :h3] = b3
    bslab[_BF_ROW, 0] = bc[0]

    meta = dict(n=n, dims=(h1, h2, h3), rows=(r_x, r_w2, r_w3, r_wf))
    return (jnp.asarray(m, jnp.bfloat16), jnp.asarray(wslab, jnp.bfloat16),
            jnp.asarray(bslab, jnp.float32), meta)


# ----------------------------------------------------------------------------
# Kernel
# ----------------------------------------------------------------------------
def _forward_math(m, xw1, w2t, w3t, wf, b1, b2, b3, bf):
    """Shared math for the Pallas kernel body and the plain-XLA reference.

    m/xw1/w2t/w3t/wf are bf16 (weights pre-transposed to (in,out)), biases f32.
    Returns the packed (N, 128) f32 result: col 0 = sigmoid classifier output,
    cols 1..feat = feature-model output, remaining lanes zero.
    """
    # TODO(synk): torch runs the aggregation in float64; TPU has no native f64,
    # so the kernel uses bf16 MXU inputs with f32 accumulation / f32 epilogues.
    f32 = jnp.float32
    bf16 = m.dtype
    h = jnp.tanh(jnp.dot(m, xw1, preferred_element_type=f32) + b1)              # (N,h1)
    hw = jnp.dot(h.astype(bf16), w2t, preferred_element_type=f32)
    h = jnp.tanh(jnp.dot(m, hw.astype(bf16), preferred_element_type=f32) + b2)  # (N,h2)
    hw = jnp.dot(h.astype(bf16), w3t, preferred_element_type=f32)
    h = jnp.tanh(jnp.dot(m, hw.astype(bf16), preferred_element_type=f32) + b3)  # (N,h3)
    z = jnp.dot(h.astype(bf16), wf, preferred_element_type=f32) + bf            # (N,128)
    lane = jax.lax.broadcasted_iota(jnp.int32, z.shape, 1)
    return jnp.where(lane == 0, jax.nn.sigmoid(z), z)


def _make_kernel(n, dims, rows):
    h1, h2, h3 = dims
    r_x, r_w2, r_w3, r_wf = rows

    def kernel(m_ref, w_ref, b_ref, out_ref):
        out_ref[...] = _forward_math(
            m_ref[...],
            w_ref[r_x:r_x + n, :h1],
            w_ref[r_w2:r_w2 + h1, :h2],
            w_ref[r_w3:r_w3 + h2, :h3],
            w_ref[r_wf:r_wf + h3, :],
            b_ref[_B1_ROW:_B1_ROW + 1, :h1],
            b_ref[_B2_ROW:_B2_ROW + 1, :h2],
            b_ref[_B3_ROW:_B3_ROW + 1, :h3],
            b_ref[_BF_ROW:_BF_ROW + 1, :])

    return kernel


def make_hybrid_forward(meta):
    """Whole HybridModel forward as one grid-less pallas_call.

    Returns a function (m_bf16, wslab, bslab) ->
        (classified (N, 1) f32, featureModelOutput (N, feat) f32)."""
    n = meta["n"]
    feat = meta["dims"][-1]
    kernel = _make_kernel(n, meta["dims"], meta["rows"])
    vmem = pl.BlockSpec(memory_space=pltpu.MemorySpace.VMEM)

    def forward(m_bf16, wslab, bslab):
        packed = pl.pallas_call(
            kernel,
            out_shape=jax.ShapeDtypeStruct((n, _LANES), jnp.float32),
            in_specs=[vmem, vmem, vmem],
            out_specs=vmem,
        )(m_bf16, wslab, bslab)
        return packed[:, 0:1], packed[:, 1:1 + feat]

    return forward


def _reference_f32(m, x, w1, b1, w2, b2, w3, b3, wc, bc):
    """Plain-XLA full-f32 reference with the ORIGINAL association (M @ H) @ W^T."""
    def layer(h, w, b):
        return jnp.tanh(jnp.dot(jnp.dot(m, h), w.T) + b.reshape(1, -1))
    h = layer(x, w1, b1)
    h = layer(h, w2, b2)
    h = layer(h, w3, b3)
    cls = jax.nn.sigmoid(jnp.dot(h, wc.T) + bc.reshape(1, -1))
    return cls, h


if __name__ == "__main__":
    key = jax.random.PRNGKey(0)
    k_a, k_w1, k_b1, k_w2, k_b2, k_w3, k_b3, k_wc, k_bc = jax.random.split(key, 9)

    N = 32                                         # graph nodes; node features = identity
    hidden_layer_config = [(4, "tanh"), (4, "tanh"), (2, "tanh")]

    # Random symmetric adjacency, no self-loops.
    upper = np.triu(np.asarray(jax.random.uniform(k_a, (N, N)) < 0.2,
                               dtype=np.float64), 1)
    A = upper + upper.T

    M = build_propagation_matrix(A)                # folded graph operator (f64)
    X = np.eye(N, dtype=np.float32)                # identity node features (as in torch)

    def xavier_normal(k, fan_out, fan_in):         # nn.init.xavier_normal_
        std = (2.0 / (fan_in + fan_out)) ** 0.5
        return std * jax.random.normal(k, (fan_out, fan_in), jnp.float32)

    def linear_bias(k, fan_out, fan_in):           # default nn.Linear bias init
        bound = 1.0 / np.sqrt(fan_in)
        return jax.random.uniform(k, (fan_out,), jnp.float32, -bound, bound)

    dims = [N] + [h for h, _ in hidden_layer_config]      # 32 -> 4 -> 4 -> 2
    w1, b1 = xavier_normal(k_w1, dims[1], dims[0]), linear_bias(k_b1, dims[1], dims[0])
    w2, b2 = xavier_normal(k_w2, dims[2], dims[1]), linear_bias(k_b2, dims[2], dims[1])
    w3, b3 = xavier_normal(k_w3, dims[3], dims[2]), linear_bias(k_b3, dims[3], dims[2])
    wc, bc = xavier_normal(k_wc, 1, dims[3]), linear_bias(k_bc, 1, dims[3])

    # Init-time fold + pack (no per-call transposes, casts or tiny operands).
    m_bf16, wslab, bslab, meta = pack_hybrid_params(M, X, w1, b1, w2, b2, w3, b3, wc, bc)
    forward = jax.jit(make_hybrid_forward(meta))

    classified, feature = forward(m_bf16, wslab, bslab)
    jax.block_until_ready((classified, feature))

    # Reference 1: identical math on the same packed bf16 operands, plain XLA.
    h1, h2, h3 = meta["dims"]
    r_x, r_w2, r_w3, r_wf = meta["rows"]
    ref_packed = _forward_math(
        m_bf16,
        wslab[r_x:r_x + N, :h1], wslab[r_w2:r_w2 + h1, :h2],
        wslab[r_w3:r_w3 + h2, :h3], wslab[r_wf:r_wf + h3, :],
        bslab[_B1_ROW:_B1_ROW + 1, :h1], bslab[_B2_ROW:_B2_ROW + 1, :h2],
        bslab[_B3_ROW:_B3_ROW + 1, :h3], bslab[_BF_ROW:_BF_ROW + 1, :])
    ref_cls, ref_feat = ref_packed[:, 0:1], ref_packed[:, 1:1 + h3]

    # Reference 2: full-f32, original association; loose check on the bf16 path.
    f32_cls, f32_feat = _reference_f32(jnp.asarray(M, jnp.float32), jnp.asarray(X),
                                       w1, b1, w2, b2, w3, b3, wc, bc)

    assert classified.shape == (N, 1) and feature.shape == (N, dims[3])
    assert jnp.allclose(classified, ref_cls, atol=1e-4, rtol=1e-4)
    assert jnp.allclose(feature, ref_feat, atol=1e-4, rtol=1e-4)
    assert jnp.allclose(classified, f32_cls, atol=5e-2, rtol=0.0)
    assert jnp.allclose(feature, f32_feat, atol=5e-2, rtol=0.0)
    print("KERNEL_OK")
</pallas_src>

<mosaic_0001>
module attributes {stable_mosaic.version = 11 : i64} {
  func.func @kernel(%arg0: memref<32x32xbf16, #tpu.memory_space<vmem>>, %arg1: memref<80x128xbf16, #tpu.memory_space<vmem>>, %arg2: memref<32x128xf32, #tpu.memory_space<vmem>>, %arg3: memref<32x128xf32, #tpu.memory_space<vmem>>) attributes {dimension_semantics = [], scalar_prefetch = 0 : i64, scratch_operands = 0 : i64, tpu.core_type = #tpu.core_type<tc>} {
    %c0 = arith.constant 0 : index
    %c0_0 = arith.constant 0 : index
    %0 = vector.load %arg0[%c0, %c0_0] : memref<32x32xbf16, #tpu.memory_space<vmem>>, vector<32x32xbf16>
    %c0_1 = arith.constant 0 : index
    %c0_2 = arith.constant 0 : index
    %1 = vector.load %arg1[%c0_1, %c0_2] : memref<80x128xbf16, #tpu.memory_space<vmem>>, vector<32x4xbf16>
    %c32 = arith.constant 32 : index
    %c0_3 = arith.constant 0 : index
    %2 = vector.load %arg1[%c32, %c0_3] : memref<80x128xbf16, #tpu.memory_space<vmem>>, vector<4x4xbf16>
    %c48 = arith.constant 48 : index
    %c0_4 = arith.constant 0 : index
    %3 = vector.load %arg1[%c48, %c0_4] : memref<80x128xbf16, #tpu.memory_space<vmem>>, vector<4x2xbf16>
    %c64 = arith.constant 64 : index
    %c0_5 = arith.constant 0 : index
    %4 = vector.load %arg1[%c64, %c0_5] : memref<80x128xbf16, #tpu.memory_space<vmem>>, vector<2x128xbf16>
    %c0_6 = arith.constant 0 : index
    %c0_7 = arith.constant 0 : index
    %5 = vector.load %arg2[%c0_6, %c0_7] : memref<32x128xf32, #tpu.memory_space<vmem>>, vector<1x4xf32>
    %c8 = arith.constant 8 : index
    %c0_8 = arith.constant 0 : index
    %6 = vector.load %arg2[%c8, %c0_8] : memref<32x128xf32, #tpu.memory_space<vmem>>, vector<1x4xf32>
    %c16 = arith.constant 16 : index
    %c0_9 = arith.constant 0 : index
    %7 = vector.load %arg2[%c16, %c0_9] : memref<32x128xf32, #tpu.memory_space<vmem>>, vector<1x2xf32>
    %c24 = arith.constant 24 : index
    %c0_10 = arith.constant 0 : index
    %8 = vector.load %arg2[%c24, %c0_10] : memref<32x128xf32, #tpu.memory_space<vmem>>, vector<1x128xf32>
    %cst = arith.constant dense<0.000000e+00> : vector<32x4xf32>
    %9 = tpu.matmul %0, %1, %cst {dimension_numbers = #tpu.dot_dimension_numbers<[1], [0], [0], [1], [0, 0, 1, 1], [], []>} : vector<32x32xbf16>, vector<32x4xbf16>, vector<32x4xf32> -> vector<32x4xf32>
    %10 = vector.broadcast %5 : vector<1x4xf32> to vector<32x4xf32>
    %11 = arith.addf %9, %10 : vector<32x4xf32>
    %12 = math.tanh %11 : vector<32x4xf32>
    %13 = arith.truncf %12 : vector<32x4xf32> to vector<32x4xbf16>
    %cst_11 = arith.constant dense<0.000000e+00> : vector<32x4xf32>
    %14 = tpu.matmul %13, %2, %cst_11 {dimension_numbers = #tpu.dot_dimension_numbers<[1], [0], [0], [1], [0, 0, 1, 1], [], []>} : vector<32x4xbf16>, vector<4x4xbf16>, vector<32x4xf32> -> vector<32x4xf32>
    %15 = arith.truncf %14 : vector<32x4xf32> to vector<32x4xbf16>
    %cst_12 = arith.constant dense<0.000000e+00> : vector<32x4xf32>
    %16 = tpu.matmul %0, %15, %cst_12 {dimension_numbers = #tpu.dot_dimension_numbers<[1], [0], [0], [1], [0, 0, 1, 1], [], []>} : vector<32x32xbf16>, vector<32x4xbf16>, vector<32x4xf32> -> vector<32x4xf32>
    %17 = vector.broadcast %6 : vector<1x4xf32> to vector<32x4xf32>
    %18 = arith.addf %16, %17 : vector<32x4xf32>
    %19 = math.tanh %18 : vector<32x4xf32>
    %20 = arith.truncf %19 : vector<32x4xf32> to vector<32x4xbf16>
    %cst_13 = arith.constant dense<0.000000e+00> : vector<32x2xf32>
    %21 = tpu.matmul %20, %3, %cst_13 {dimension_numbers = #tpu.dot_dimension_numbers<[1], [0], [0], [1], [0, 0, 1, 1], [], []>} : vector<32x4xbf16>, vector<4x2xbf16>, vector<32x2xf32> -> vector<32x2xf32>
    %22 = arith.truncf %21 : vector<32x2xf32> to vector<32x2xbf16>
    %cst_14 = arith.constant dense<0.000000e+00> : vector<32x2xf32>
    %23 = tpu.matmul %0, %22, %cst_14 {dimension_numbers = #tpu.dot_dimension_numbers<[1], [0], [0], [1], [0, 0, 1, 1], [], []>} : vector<32x32xbf16>, vector<32x2xbf16>, vector<32x2xf32> -> vector<32x2xf32>
    %24 = vector.broadcast %7 : vector<1x2xf32> to vector<32x2xf32>
    %25 = arith.addf %23, %24 : vector<32x2xf32>
    %26 = math.tanh %25 : vector<32x2xf32>
    %27 = arith.truncf %26 : vector<32x2xf32> to vector<32x2xbf16>
    %cst_15 = arith.constant dense<0.000000e+00> : vector<32x128xf32>
    %28 = tpu.matmul %27, %4, %cst_15 {dimension_numbers = #tpu.dot_dimension_numbers<[1], [0], [0], [1], [0, 0, 1, 1], [], []>} : vector<32x2xbf16>, vector<2x128xbf16>, vector<32x128xf32> -> vector<32x128xf32>
    %29 = vector.broadcast %8 : vector<1x128xf32> to vector<32x128xf32>
    %30 = arith.addf %28, %29 : vector<32x128xf32>
    %31 = tpu.iota {dimensions = array<i32: 1>} : vector<32x128xi32>
    %c0_i32 = arith.constant 0 : i32
    %32 = vector.broadcast %c0_i32 : i32 to vector<32x128xi32>
    %33 = arith.cmpi eq, %31, %32 : vector<32x128xi32>
    %34 = arith.negf %30 : vector<32x128xf32>
    %35 = math.exp %34 : vector<32x128xf32>
    %cst_16 = arith.constant 1.000000e+00 : f32
    %36 = vector.broadcast %cst_16 : f32 to vector<32x128xf32>
    %37 = arith.addf %36, %35 : vector<32x128xf32>
    %38 = arith.divf %36, %37 : vector<32x128xf32>
    %39 = arith.select %33, %38, %30 : vector<32x128xi1>, vector<32x128xf32>
    %c0_17 = arith.constant 0 : index
    %c0_18 = arith.constant 0 : index
    %40 = vector.load %arg3[%c0_17, %c0_18] : memref<32x128xf32, #tpu.memory_space<vmem>>, vector<32x128xf32>
    tpu.vector_store %arg3[%c0_17, %c0_18], %39 {strides = array<i32>} : memref<32x128xf32, #tpu.memory_space<vmem>>, vector<32x128xf32>,
    return
  }
}

</mosaic_0001>

<bundles_post_ra>
// kernel: forward.1
= control target key start
LH: loop header
LB: loop body
LE: loop exit
PB: predicated region body
PF: predicated region fallthrough
CT: control target
= control target key end

     0   :  { %8 = vsyncpa [#allocation3], 0  ;;  %s624_s0 = inlined_call_operand.hbm [shape: bf16[32,32], index: 0, kind: input, shape index: {}]   ;;  %s625_s1 = inlined_call_operand.hbm [shape: bf16[80,128], index: 1, kind: input, shape index: {}]   ;;  %s626_s2 = inlined_call_operand.hbm [shape: f32[32,128], index: 2, kind: input, shape index: {}]   ;;  %s627_s3 = inlined_call_operand.vmem [shape: f32[32,128], index: 3, kind: output, shape index: {}]  }
   0x1   :  { %9 = vsyncpa [#allocation5], 0  ;;  %s27_s14 = sshll.u32 %s625_s1, 4  ;;  %s535_s15 = smov [#allocation4]   ;;  %s28_s14 = int_to_ptr.hbm [resolvable:$true] %s27_s14 }
   0x2   :  { %s29_s16 = sshll.u32 %s535_s15, 4  ;;  %s14_s19 = sshll.u32 %s624_s0, 4  ;;  %s30_s16 = int_to_ptr.vmem [resolvable:$true] %s29_s16  ;;  %s15_s19 = int_to_ptr.hbm [resolvable:$true] %s14_s19 }
   0x3   :  { %s536_s20 = smov 64   ;;  %s537_s21 = smov 4  }
   0x4   :  { %35 = dma.hbm_to_vmem [thread:$0]  %s28_s14, 640, %s30_s16, [#allocation5], %s536_s20, %s536_s20, %s537_s21  }
   0x5   :  { %s538_s22 = smov [#allocation2]   ;;  %s40_s26 = sshll.u32 %s626_s2, 4  ;;  %s41_s26 = int_to_ptr.hbm [resolvable:$true] %s40_s26 }
   0x6   :  { %s16_s23 = sshll.u32 %s538_s22, 4  ;;  %s539_s1 = smov [#allocation6]   ;;  %s17_s23 = int_to_ptr.vmem [resolvable:$true] %s16_s23 }
   0x7   :  { %22 = dma.hbm_to_vmem [thread:$0]  %s15_s19, 256, %s17_s23, [#allocation3], %s536_s20, %s536_s20, %s537_s21  }
   0x8   :  { %s42_s27 = sshll.u32 %s539_s1, 4  ;;  %s540_s28 = smov 128   ;;  %s43_s27 = int_to_ptr.vmem [resolvable:$true] %s42_s27 }
   0x9   :  { %s541_s29 = smov 8  }
   0xa   :  { %48 = dma.hbm_to_vmem [thread:$0]  %s41_s26, 512, %s43_s27, [#allocation5], %s540_s28, %s540_s28, %s541_s29  }
   0xb   :  { %531 = dma.done.wait [#allocation3], 256  }
   0xc   :  { %532 = vsyncadd [#allocation3], 4294967040 }
   0xd   :  { %533 = dma.done.wait [#allocation5], 1152  }
   0xe   :  { %534 = vsyncadd [#allocation5], 4294966144  ;;  %v405_v0 = vld [vmem:[#allocation4 + $0x8] sm:$0xff]  ;;  %v404_v1 = vld [vmem:[#allocation4] sm:$0xff]  ;;  %vm100_vm0 = vcmask 261120   ;;  %vm139_vm1 = vcmask 1041408  }
   0xf   :  { %113 = vmatpush.bf16.msra.mxu0 %v405_v0  ;;  %v571_v2 = vld [vmem:[#allocation2] sm:$0xff]  ;;  %v575_v3 = vld [vmem:[#allocation2 + $0x8] sm:$0xff]  ;;  %v415_v7 = vld [vmem:[#allocation6] ss:$0 sm:$0xff]  ;;  %vm132_vm2 = vcmask 31744   ;;  %vm254_vm3 = vcmask 1040384  }
  0x10   :  { %v70_v4 = vld [vmem:[#allocation4 + $0x10] sm:$0x3]  ;;  %v71_v27 = vld [vmem:[#allocation4 + $0x18] sm:$0x3]  ;;  %v72_v50 = vld [vmem:[#allocation4 + $0x20] sm:$0x1] }
  0x11   :  { %v141_v5 = vsel %vm139_vm1, %v70_v4, 0  ;;  %v197_v28 = vsel %vm139_vm1, %v71_v27, 0  ;;  %v416_v30 = vld [vmem:[#allocation6 + $0x8] ss:$0 sm:$0xff]  ;;  %v256_v51 = vsel %vm254_vm3, %v72_v50, 0  ;;  %vm247_vm4 = vcmask 15360  }
  0x12   :  { %406 = vmatpush.bf16.msra.mxu1 %v141_v5  ;;  %407 = vmatpush.bf16.msra.mxu3 %v197_v28  ;;  %v417_v53 = vld [vmem:[#allocation6 + $0x10] ss:$0 sm:$0xff] }
  0x13   :  { %114 = vmatpush.bf16.msra.mxu0 %v404_v1 }
  0x16   :  { %386 = vmatmul.msk.bf16.vlgmr.msra.gmra.mxu0 %vm100_vm0, %v571_v2  ;;  %265 = vmatpush.bf16.msrb.mxu3 %v256_v51 }
  0x17   :  { %150 = vmatpush.bf16.msrb.mxu0 %v141_v5 }
  0x26   :  { %387 = vmatmul.msk.bf16.gmra.mxu0 %vm100_vm0, %v575_v3 }
  0x93   :  { %v116_v6 = vpop.f32.mrf.mxu0 }
  0x94   :  { %v117_v8 = vadd.f32 %v415_v7, %v116_v6 }
  0x96   :  { %419 = vtanh.f32 %v117_v8 }
  0x9b   :  { %v118_v9 = vpop.f32.mrf.mxu0 }
  0x9c   :  { %v119_v10 = vadd.f32 %v415_v7, %v118_v9  ;;  %v420_v11 = vpop.eup %419 }
  0x9e   :  { %421 = vtanh.f32 %v119_v10 }
  0xa3   :  { %v121_v12 = vpop.f32.mrf.mxu0 }
  0xa4   :  { %v422_v13 = vpop.eup %421  ;;  %v122_v15 = vadd.f32 %v415_v7, %v121_v12 }
  0xa5   :  { %v130_v14 = vpack.c.bf16 %v422_v13, %v420_v11 }
  0xa6   :  { %423 = vtanh.f32 %v122_v15 }
  0xa7   :  { %388 = vmatmul.msk.bf16.vlgmr.msrb.gmra.mxu0 %vm132_vm2, %v130_v14 }
  0xab   :  { %v123_v16 = vpop.f32.mrf.mxu0 }
  0xac   :  { %v124_v17 = vadd.f32 %v415_v7, %v123_v16  ;;  %v424_v18 = vpop.eup %423 }
  0xae   :  { %425 = vtanh.f32 %v124_v17  ;;  %v277_v17 = vlaneseq }
  0xb4   :  { %v426_v19 = vpop.eup %425 }
  0xb5   :  { %v131_v20 = vpack.c.bf16 %v426_v19, %v424_v18 }
  0xb7   :  { %389 = vmatmul.msk.bf16.vlgmr.msra.gmra.mxu1 %vm132_vm2, %v131_v20 }
 0x124   :  { %v152_v21 = vpop.f32.mrf.mxu0 }
 0x12c   :  { %v154_v25 = vpop.f32.mrf.mxu0 }
 0x12d   :  { %v162_v26 = vpack.c.bf16 %v154_v25, %v152_v21  ;;  %v596_v21 = vand.u32 127, %v277_v17 }
 0x12f   :  { %vm279_vm7 = vcmp.eq.s32.totalorder %v596_v21, 0 }
 0x134   :  { %v157_v22 = vpop.f32.mrf.mxu1 }
 0x13c   :  { %v159_v23 = vpop.f32.mrf.mxu1 }
 0x13d   :  { %v163_v24 = vpack.c.bf16 %v159_v23, %v157_v22 }
 0x13f   :  { %171 = vmatpush.bf16.msra.mxu2 %v163_v24 }
 0x143   :  { %172 = vmatpush.bf16.msra.mxu2 %v162_v26 }
 0x146   :  { %390 = vmatmul.msk.bf16.vlgmr.msra.gmra.mxu2 %vm100_vm0, %v571_v2 }
 0x147   :  { %206 = vmatpush.bf16.msrb.mxu2 %v197_v28 }
 0x156   :  { %391 = vmatmul.msk.bf16.gmra.mxu2 %vm100_vm0, %v575_v3 }
 0x1c9   :  { %v174_v29 = vpop.f32.mrf.mxu2 }
 0x1ca   :  { %v175_v31 = vadd.f32 %v416_v30, %v174_v29 }
 0x1cc   :  { %427 = vtanh.f32 %v175_v31 }
 0x1d1   :  { %v176_v32 = vpop.f32.mrf.mxu2 }
 0x1d2   :  { %v177_v33 = vadd.f32 %v416_v30, %v176_v32  ;;  %v428_v34 = vpop.eup %427 }
 0x1d4   :  { %429 = vtanh.f32 %v177_v33 }
 0x1d9   :  { %v179_v35 = vpop.f32.mrf.mxu2 }
 0x1da   :  { %v430_v36 = vpop.eup %429  ;;  %v180_v38 = vadd.f32 %v416_v30, %v179_v35 }
 0x1db   :  { %v188_v37 = vpack.c.bf16 %v430_v36, %v428_v34 }
 0x1dc   :  { %431 = vtanh.f32 %v180_v38 }
 0x1dd   :  { %392 = vmatmul.msk.bf16.vlgmr.msrb.gmra.mxu2 %vm132_vm2, %v188_v37 }
 0x1e1   :  { %v181_v39 = vpop.f32.mrf.mxu2 }
 0x1e2   :  { %v182_v40 = vadd.f32 %v416_v30, %v181_v39  ;;  %v432_v41 = vpop.eup %431 }
 0x1e4   :  { %433 = vtanh.f32 %v182_v40 }
 0x1ea   :  { %v434_v42 = vpop.eup %433 }
 0x1eb   :  { %v189_v43 = vpack.c.bf16 %v434_v42, %v432_v41 }
 0x1ed   :  { %393 = vmatmul.msk.bf16.vlgmr.msra.gmra.mxu3 %vm132_vm2, %v189_v43 }
 0x260   :  { %v208_v44 = vpop.f32.mrf.mxu2 }
 0x268   :  { %v210_v48 = vpop.f32.mrf.mxu2 }
 0x269   :  { %v218_v49 = vpack.c.bf16 %v210_v48, %v208_v44 }
 0x270   :  { %v213_v45 = vpop.f32.mrf.mxu3 }
 0x278   :  { %v215_v46 = vpop.f32.mrf.mxu3 }
 0x279   :  { %v219_v47 = vpack.c.bf16 %v215_v46, %v213_v45 }
 0x27b   :  { %227 = vmatpush.bf16.msrb.mxu1 %v219_v47 }
 0x27f   :  { %228 = vmatpush.bf16.msrb.mxu1 %v218_v49 }
 0x282   :  { %394 = vmatmul.msk.bf16.vlgmr.msrb.gmra.mxu1 %vm100_vm0, %v571_v2 }
 0x292   :  { %395 = vmatmul.msk.bf16.gmra.mxu1 %vm100_vm0, %v575_v3  ;;  %v418_v3 = vld [vmem:[#allocation6 + $0x18] ss:$0 sm:$0xff] }
 0x2ff   :  { %v230_v52 = vpop.f32.mrf.mxu1 }
 0x300   :  { %v231_v54 = vadd.f32 %v417_v53, %v230_v52 }
 0x302   :  { %435 = vtanh.f32 %v231_v54 }
 0x307   :  { %v232_v55 = vpop.f32.mrf.mxu1 }
 0x308   :  { %v233_v56 = vadd.f32 %v417_v53, %v232_v55  ;;  %v436_v57 = vpop.eup %435 }
 0x30a   :  { %437 = vtanh.f32 %v233_v56 }
 0x30f   :  { %v235_v58 = vpop.f32.mrf.mxu1 }
 0x310   :  { %v438_v59 = vpop.eup %437  ;;  %v236_v61 = vadd.f32 %v417_v53, %v235_v58 }
 0x311   :  { %v244_v60 = vpack.c.bf16 %v438_v59, %v436_v57 }
 0x312   :  { %439 = vtanh.f32 %v236_v61 }
 0x313   :  { %396 = vmatmul.msk.bf16.vlgmr.msrb.gmra.mxu3 %vm247_vm4, %v244_v60 }
 0x317   :  { %v237_v62 = vpop.f32.mrf.mxu1 }
 0x318   :  { %v238_v63 = vadd.f32 %v417_v53, %v237_v62  ;;  %v440_v0 = vpop.eup %439 }
 0x31a   :  { %441 = vtanh.f32 %v238_v63 }
 0x320   :  { %v442_v1 = vpop.eup %441 }
 0x321   :  { %v245_v2 = vpack.c.bf16 %v442_v1, %v440_v0 }
 0x323   :  { %397 = vmatmul.msk.bf16.gmra.mxu3 %vm247_vm4, %v245_v2 }
 0x396   :  { %v267_v4 = vpop.f32.mrf.mxu3 }
 0x397   :  { %v268_v5 = vadd.f32 %v418_v3, %v267_v4 }
 0x399   :  { %v398_v6 = vmul.f32 -1.442695, %v268_v5 }
 0x39b   :  { %443 = vpow2.f32 %v398_v6 }
 0x39e   :  { %v269_v7 = vpop.f32.mrf.mxu3 }
 0x39f   :  { %v270_v8 = vadd.f32 %v418_v3, %v269_v7 }
 0x3a1   :  { %v444_v9 = vpop.eup %443  ;;  %v399_v10 = vmul.f32 -1.442695, %v270_v8 }
 0x3a2   :  { %v292_v11 = vadd.f32 1.0, %v444_v9 }
 0x3a3   :  { %445 = vpow2.f32 %v399_v10 }
 0x3a4   :  { %447 = vrcp.f32 %v292_v11  ;;  %v307_v22 = vand.u32 2147483648, %v292_v11  ;;  %v305_v25 = vand.u32 2147483647, %v292_v11  ;;  %vm301_vm6 = vweird.f32 %v292_v11 }
 0x3a6   :  { %v272_v12 = vpop.f32.mrf.mxu3  ;;  %v308_v31 = vor.u32 1.1754944e-38, %v307_v22  ;;  %vm306_vm9 = vcmp.eq.f32.partialorder %v305_v25, 8.507059e+37 }
 0x3a7   :  { %v593_v13 = vadd.f32 %v418_v3, %v272_v12 }
 0x3a9   :  { %v446_v14 = vpop.eup %445  ;;  %v400_v15 = vmul.f32 -1.442695, %v593_v13 }
 0x3aa   :  { %v448_v16 = vpop.eup %447  ;;  %v293_v18 = vadd.f32 1.0, %v446_v14 }
 0x3ab   :  { %v297_v19 = vmul.f32 %v448_v16, %v292_v11  ;;  %449 = vpow2.f32 %v400_v15  ;;  %vm302_vm5 = vweird.f32 %v448_v16 }
 0x3ac   :  { %451 = vrcp.f32 %v293_v18  ;;  %vm303_vm8 = vmor %vm301_vm6, %vm302_vm5  ;;  %v322_v38 = vand.u32 2147483648, %v293_v18  ;;  %v320_v40 = vand.u32 2147483647, %v293_v18  ;;  %vm316_vm11 = vweird.f32 %v293_v18 }
 0x3ad   :  { %v298_v20 = vsub.f32 1.0, %v297_v19 }
 0x3ae   :  { %v274_v23 = vpop.f32.mrf.mxu3  ;;  %v323_v44 = vor.u32 1.1754944e-38, %v322_v38  ;;  %vm321_vm13 = vcmp.eq.f32.partialorder %v320_v40, 8.507059e+37 }
 0x3af   :  { %v299_v24 = vmul.f32 %v448_v16, %v298_v20  ;;  %v598_v26 = vadd.f32 %v418_v3, %v274_v23 }
 0x3b1   :  { %v450_v27 = vpop.eup %449  ;;  %v300_v28 = vadd.f32 %v448_v16, %v299_v24  ;;  %v401_v29 = vmul.f32 -1.442695, %v598_v26 }
 0x3b2   :  { %v452_v30 = vpop.eup %451  ;;  %v294_v32 = vadd.f32 1.0, %v450_v27 }
 0x3b3   :  { %v304_v33 = vsel %vm303_vm8, %v448_v16, %v300_v28  ;;  %v312_v34 = vmul.f32 %v452_v30, %v293_v18  ;;  %453 = vpow2.f32 %v401_v29  ;;  %vm317_vm10 = vweird.f32 %v452_v30 }
 0x3b4   :  { %v309_v35 = vsel %vm306_vm9, %v308_v31, %v304_v33  ;;  %455 = vrcp.f32 %v294_v32  ;;  %vm318_vm12 = vmor %vm316_vm11, %vm317_vm10  ;;  %v337_v51 = vand.u32 2147483648, %v294_v32  ;;  %v335_v53 = vand.u32 2147483647, %v294_v32 }
 0x3b5   :  { %v356_v36 = vsel %vm279_vm7, %v309_v35, %v268_v5  ;;  %v313_v37 = vsub.f32 1.0, %v312_v34  ;;  %vm331_vm15 = vweird.f32 %v294_v32 }
 0x3b6   :  { %360 = vst [vmem:[%s627_s3] sm:$0xff] %v356_v36  ;;  %v338_v56 = vor.u32 1.1754944e-38, %v337_v51  ;;  %vm336_vm1 = vcmp.eq.f32.partialorder %v335_v53, 8.507059e+37 }
 0x3b7   :  { %v314_v39 = vmul.f32 %v452_v30, %v313_v37 }
 0x3b9   :  { %v454_v41 = vpop.eup %453  ;;  %v315_v42 = vadd.f32 %v452_v30, %v314_v39 }
 0x3ba   :  { %v456_v43 = vpop.eup %455  ;;  %v295_v45 = vadd.f32 1.0, %v454_v41 }
 0x3bb   :  { %v319_v46 = vsel %vm318_vm12, %v452_v30, %v315_v42  ;;  %v327_v47 = vmul.f32 %v456_v43, %v294_v32  ;;  %vm332_vm14 = vweird.f32 %v456_v43 }
 0x3bc   :  { %v324_v48 = vsel %vm321_vm13, %v323_v44, %v319_v46  ;;  %457 = vrcp.f32 %v295_v45  ;;  %vm333_vm0 = vmor %vm331_vm15, %vm332_vm14  ;;  %v352_v62 = vand.u32 2147483648, %v295_v45  ;;  %v350_v0 = vand.u32 2147483647, %v295_v45 }
 0x3bd   :  { %v357_v49 = vsel %vm279_vm7, %v324_v48, %v270_v8  ;;  %v328_v50 = vsub.f32 1.0, %v327_v47  ;;  %vm346_vm3 = vweird.f32 %v295_v45 }
 0x3be   :  { %361 = vst [vmem:[%s627_s3 + $0x8] sm:$0xff] %v357_v49  ;;  %v353_v2 = vor.u32 1.1754944e-38, %v352_v62  ;;  %vm351_vm5 = vcmp.eq.f32.partialorder %v350_v0, 8.507059e+37 }
 0x3bf   :  { %v329_v52 = vmul.f32 %v456_v43, %v328_v50 }
 0x3c1   :  { %v330_v54 = vadd.f32 %v456_v43, %v329_v52 }
 0x3c2   :  { %v458_v55 = vpop.eup %457 }
 0x3c3   :  { %v334_v57 = vsel %vm333_vm0, %v456_v43, %v330_v54  ;;  %v342_v58 = vmul.f32 %v458_v55, %v295_v45  ;;  %vm347_vm2 = vweird.f32 %v458_v55 }
 0x3c4   :  { %v339_v59 = vsel %vm336_vm1, %v338_v56, %v334_v57  ;;  %vm348_vm4 = vmor %vm346_vm3, %vm347_vm2 }
 0x3c5   :  { %v358_v60 = vsel %vm279_vm7, %v339_v59, %v593_v13  ;;  %v343_v61 = vsub.f32 1.0, %v342_v58 }
 0x3c6   :  { %362 = vst [vmem:[%s627_s3 + $0x10] sm:$0xff] %v358_v60 }
 0x3c7   :  { %v344_v63 = vmul.f32 %v458_v55, %v343_v61 }
 0x3c9   :  { %v345_v1 = vadd.f32 %v458_v55, %v344_v63 }
 0x3cb   :  { %v349_v3 = vsel %vm348_vm4, %v458_v55, %v345_v1 }
 0x3cc   :  { %v354_v4 = vsel %vm351_vm5, %v353_v2, %v349_v3 }
 0x3cd   :  { %v359_v5 = vsel %vm279_vm7, %v354_v4, %v598_v26 }
 0x3ce   :  { %363 = vst [vmem:[%s627_s3 + $0x18] sm:$0xff] %v359_v5 }
 0x3cf   :  { %368 = vsyncpa [#allocation3], 1 }
 0x3d0   :  { %369 = vsyncpa [#allocation5], 1 }

</bundles_post_ra>
